<compile_context>
chip_gen: v7x
topology: tpu7x:2x2x1
jax: 0.10.0
libtpu: 0.0.40
codegen_flags: <defaults>
</compile_context>

<pallas_src>
import functools

import jax
import jax.numpy as jnp
from jax.experimental import pallas as pl
from jax.experimental.pallas import tpu as pltpu

_LN_EPS = 1e-5            # torch.nn.LayerNorm default eps
_ROW_TILE_CAP = 1024      # sweep target from the review (512/1024 ~ 85% of roofline)


# ----------------------------------------------------------------------------- helpers ---

def _round_up(x, m):
    return ((x + m - 1) // m) * m


def _vmem_capacity_bytes():
    """Generation-aware VMEM capacity (v5e/v6e: 128 MiB, v7x: 64 MiB)."""
    try:
        info = pltpu.get_tpu_info()
        cap = getattr(info, "vmem_capacity_bytes", None)
        if cap:
            return int(cap)
    except Exception:
        pass
    return 64 * 1024 * 1024   # conservative fallback (v7x per-TensorCore)


def _vmem_limit_bytes():
    # Raise the scoped-VMEM limit well above the 16/32 MiB default, leaving headroom.
    return int(min(_vmem_capacity_bytes() * 0.75, 100 * 1024 * 1024))


def _choose_row_tile(rows, row_bytes, reserved=0):
    """Largest row tile (multiple of 8, <= cap, <= rows rounded up) that fits VMEM."""
    budget = int(_vmem_capacity_bytes() * 0.5) - reserved
    tm = budget // max(row_bytes, 1)
    tm = min(tm, _ROW_TILE_CAP, _round_up(rows, 8))
    tm = (tm // 8) * 8
    return max(tm, 8)


def _choose_col_tile(cols):
    # Full output width if small (block == full dim is always legal), else 128-aligned.
    return cols if cols <= 512 else 512


def _choose_k_tile(k):
    # K is a reduction axis: the tile must divide K exactly (partial reduction blocks
    # would accumulate garbage), and be 128-aligned when it is not the full dim.
    if k <= 2048:
        return k
    for tk in (1024, 512, 256, 128):
        if k % tk == 0:
            return tk
    return k


def _gelu(x):
    # tanh-approximate GELU (same formula used in kernels and references).
    return 0.5 * x * (1.0 + jnp.tanh(0.7978845608028654 * (x + 0.044715 * x * x * x)))


# ----------------------------------------------------------------------------- kernels ---

def _layernorm_kernel(x_ref, g_ref, b_ref, o_ref):
    # Per-row LayerNorm, single-pass stats (one sum + one sum-of-squares), affine fused.
    x = x_ref[...].astype(jnp.float32)
    inv_d = 1.0 / x.shape[-1]
    s = jnp.sum(x, axis=-1, keepdims=True)
    sq = jnp.sum(x * x, axis=-1, keepdims=True)
    mean = s * inv_d
    var = jnp.maximum(sq * inv_d - mean * mean, 0.0)     # biased variance, as in torch
    y = (x - mean) * jax.lax.rsqrt(var + _LN_EPS)
    o_ref[...] = (y * g_ref[...].astype(jnp.float32)
                  + b_ref[...].astype(jnp.float32)).astype(o_ref.dtype)


def _ln_linear_kernel(x_ref, g_ref, b_ref, w_ref, bias_ref, o_ref, xn_ref, *, activation):
    # Fused: out = act( LayerNorm(x) @ w + bias ).
    # LN of the row tile is computed once (at the first Cout tile) into VMEM scratch
    # and reused for all Cout tiles of the same row tile.
    @pl.when(pl.program_id(1) == 0)
    def _():
        x = x_ref[...].astype(jnp.float32)
        inv_d = 1.0 / x.shape[-1]
        s = jnp.sum(x, axis=-1, keepdims=True)
        sq = jnp.sum(x * x, axis=-1, keepdims=True)
        mean = s * inv_d
        var = jnp.maximum(sq * inv_d - mean * mean, 0.0)
        xn = (x - mean) * jax.lax.rsqrt(var + _LN_EPS)
        xn_ref[...] = (xn * g_ref[...].astype(jnp.float32)
                       + b_ref[...].astype(jnp.float32))

    y = jnp.dot(xn_ref[...], w_ref[...].astype(jnp.float32),
                preferred_element_type=jnp.float32)
    y = y + bias_ref[...].astype(jnp.float32)
    if activation is not None:
        y = activation(y)
    o_ref[...] = y.astype(o_ref.dtype)


def _linear_kernel(x_ref, w_ref, bias_ref, o_ref, acc_ref, *, activation):
    # out = act(x @ w + bias), tiled over K with an f32 VMEM accumulator.
    k = pl.program_id(2)

    @pl.when(k == 0)
    def _():
        acc_ref[...] = jnp.zeros_like(acc_ref)

    acc_ref[...] += jnp.dot(x_ref[...], w_ref[...], preferred_element_type=jnp.float32)

    @pl.when(k == pl.num_programs(2) - 1)
    def _():
        y = acc_ref[...] + bias_ref[...].astype(jnp.float32)
        if activation is not None:
            y = activation(y)
        o_ref[...] = y.astype(o_ref.dtype)


# ---------------------------------------------------------------------------- wrappers ---

def pallas_layer_norm(x, gamma, beta):
    """LayerNorm over the last dim (arbitrary leading dims), row-tiled, no pad/slice."""
    orig_shape = x.shape
    D = orig_shape[-1]
    x2 = x.reshape(-1, D)
    R = x2.shape[0]
    row_bytes = 4 * D * 4                       # in + out, double-buffered, f32
    TM = _choose_row_tile(R, row_bytes)
    out = pl.pallas_call(
        _layernorm_kernel,
        grid=(pl.cdiv(R, TM),),
        out_shape=jax.ShapeDtypeStruct((R, D), x.dtype),
        in_specs=[pl.BlockSpec((TM, D), lambda i: (i, 0)),
                  pl.BlockSpec((1, D), lambda i: (0, 0)),
                  pl.BlockSpec((1, D), lambda i: (0, 0))],
        out_specs=pl.BlockSpec((TM, D), lambda i: (i, 0)),
        compiler_params=pltpu.CompilerParams(
            dimension_semantics=("parallel",),
            vmem_limit_bytes=_vmem_limit_bytes()),
    )(x2, gamma.reshape(1, D), beta.reshape(1, D))
    return out.reshape(orig_shape)


def fused_layernorm_linear(x, gamma, beta, w, b, activation=None):
    """out = act( LayerNorm(x) @ w + b ) in one kernel (no HBM round trip of LN(x))."""
    orig_shape = x.shape
    K = orig_shape[-1]
    Cout = w.shape[1]
    x2 = x.reshape(-1, K)
    R = x2.shape[0]
    TN = _choose_col_tile(Cout)
    reserved = 2 * K * TN * 4 + 2 * TN * 4                 # weight + bias tiles
    row_bytes = (3 * K + 2 * TN) * 4                       # x(x2 bufs) + scratch + out(x2)
    TM = _choose_row_tile(R, row_bytes, reserved=reserved)
    out = pl.pallas_call(
        functools.partial(_ln_linear_kernel, activation=activation),
        grid=(pl.cdiv(R, TM), pl.cdiv(Cout, TN)),
        out_shape=jax.ShapeDtypeStruct((R, Cout), x.dtype),
        in_specs=[pl.BlockSpec((TM, K), lambda i, j: (i, 0)),
                  pl.BlockSpec((1, K), lambda i, j: (0, 0)),
                  pl.BlockSpec((1, K), lambda i, j: (0, 0)),
                  pl.BlockSpec((K, TN), lambda i, j: (0, j)),
                  pl.BlockSpec((1, TN), lambda i, j: (0, j))],
        out_specs=pl.BlockSpec((TM, TN), lambda i, j: (i, j)),
        scratch_shapes=[pltpu.VMEM((TM, K), jnp.float32)],
        compiler_params=pltpu.CompilerParams(
            dimension_semantics=("parallel", "arbitrary"),
            vmem_limit_bytes=_vmem_limit_bytes()),
    )(x2, gamma.reshape(1, K), beta.reshape(1, K), w, b.reshape(1, Cout))
    return out.reshape(orig_shape[:-1] + (Cout,))


def pallas_linear(x, w, b, activation=None):
    """out = act(x @ w + b), tiled over rows / Cout / K with an f32 accumulator."""
    orig_shape = x.shape
    K = orig_shape[-1]
    Cout = w.shape[1]
    x2 = x.reshape(-1, K)
    R = x2.shape[0]
    TN = _choose_col_tile(Cout)
    TK = _choose_k_tile(K)
    reserved = 2 * TK * TN * 4 + 2 * TN * 4
    row_bytes = (2 * TK + 3 * TN) * 4                      # x(x2) + out(x2) + acc
    TM = _choose_row_tile(R, row_bytes, reserved=reserved)
    out = pl.pallas_call(
        functools.partial(_linear_kernel, activation=activation),
        grid=(pl.cdiv(R, TM), pl.cdiv(Cout, TN), pl.cdiv(K, TK)),
        out_shape=jax.ShapeDtypeStruct((R, Cout), x.dtype),
        in_specs=[pl.BlockSpec((TM, TK), lambda i, j, k: (i, k)),
                  pl.BlockSpec((TK, TN), lambda i, j, k: (k, j)),
                  pl.BlockSpec((1, TN), lambda i, j, k: (0, j))],
        out_specs=pl.BlockSpec((TM, TN), lambda i, j, k: (i, j)),
        scratch_shapes=[pltpu.VMEM((TM, TN), jnp.float32)],
        compiler_params=pltpu.CompilerParams(
            dimension_semantics=("parallel", "parallel", "arbitrary"),
            vmem_limit_bytes=_vmem_limit_bytes()),
    )(x2, w, b.reshape(1, Cout))
    return out.reshape(orig_shape[:-1] + (Cout,))


# --------------------------------------------------------------------------- PreNorm ----

class PreNorm:
    """Pallas port of the PyTorch PreNorm module.

    forward: x = LayerNorm(x); if context_dim: kwargs['context'] = LayerNorm(context);
             return fn(x, **kwargs)

    If fn supports it (supports_fused_prenorm), the LayerNorms are fused into fn's
    first matmuls so the normalized activations never round-trip HBM. Otherwise the
    standalone Pallas LayerNorm kernel is used (identical semantics).
    """

    def __init__(self, dim, fn, context_dim=None, *, key=None):
        self.fn = fn
        if key is None:
            key = jax.random.PRNGKey(0)
        k1, k2, k3, k4 = jax.random.split(key, 4)
        # Randomized affine params so the correctness check is non-trivial
        # (torch default init is weight=1, bias=0; the forward formula is identical).
        self.g = 1.0 + 0.05 * jax.random.normal(k1, (dim,), jnp.float32)
        self.b = 0.05 * jax.random.normal(k2, (dim,), jnp.float32)
        if context_dim is not None:
            self.gc = 1.0 + 0.05 * jax.random.normal(k3, (context_dim,), jnp.float32)
            self.bc = 0.05 * jax.random.normal(k4, (context_dim,), jnp.float32)
        else:
            self.gc = None
            self.bc = None

    def __call__(self, x, **kwargs):
        if getattr(self.fn, "supports_fused_prenorm", False):
            extra = {"x_ln": (self.g, self.b)}
            if self.gc is not None:
                extra["context_ln"] = (self.gc, self.bc)
            return self.fn(x, **kwargs, **extra)
        x = pallas_layer_norm(x, self.g, self.b)
        if self.gc is not None:
            normed_context = pallas_layer_norm(kwargs["context"], self.gc, self.bc)
            kwargs = dict(kwargs, context=normed_context)
        return self.fn(x, **kwargs)


# ------------------------------------------------------------------- example fn modules --
# PreNorm wraps an arbitrary callable `fn`; these are small concrete examples so the
# script is self-contained.  They accept optional LN params so the pre-norm fuses
# into their first projections.

class FeedForward:
    supports_fused_prenorm = True

    def __init__(self, dim, hidden, key):
        k1, k2 = jax.random.split(key, 2)
        self.w1 = jax.random.normal(k1, (dim, hidden), jnp.float32) * (dim ** -0.5)
        self.b1 = jnp.zeros((hidden,), jnp.float32)
        self.w2 = jax.random.normal(k2, (hidden, dim), jnp.float32) * (hidden ** -0.5)
        self.b2 = jnp.zeros((dim,), jnp.float32)

    def __call__(self, x, x_ln=None):
        if x_ln is not None:
            h = fused_layernorm_linear(x, x_ln[0], x_ln[1], self.w1, self.b1,
                                       activation=_gelu)
        else:
            h = pallas_linear(x, self.w1, self.b1, activation=_gelu)
        return pallas_linear(h, self.w2, self.b2)


class CrossAttention:
    supports_fused_prenorm = True

    def __init__(self, dim, context_dim, inner, key):
        k1, k2, k3, k4 = jax.random.split(key, 4)
        self.inner = inner
        self.wq = jax.random.normal(k1, (dim, inner), jnp.float32) * (dim ** -0.5)
        self.bq = jnp.zeros((inner,), jnp.float32)
        self.wk = jax.random.normal(k2, (context_dim, inner), jnp.float32) * (context_dim ** -0.5)
        self.bk = jnp.zeros((inner,), jnp.float32)
        self.wv = jax.random.normal(k3, (context_dim, inner), jnp.float32) * (context_dim ** -0.5)
        self.bv = jnp.zeros((inner,), jnp.float32)
        self.wo = jax.random.normal(k4, (inner, dim), jnp.float32) * (inner ** -0.5)
        self.bo = jnp.zeros((dim,), jnp.float32)
        # k and v projections share one kernel (and one LN of context) via concat weights.
        self.w_kv = jnp.concatenate([self.wk, self.wv], axis=1)
        self.b_kv = jnp.concatenate([self.bk, self.bv], axis=0)

    def __call__(self, x, context, x_ln=None, context_ln=None):
        if x_ln is not None:
            q = fused_layernorm_linear(x, x_ln[0], x_ln[1], self.wq, self.bq)
        else:
            q = pallas_linear(x, self.wq, self.bq)
        if context_ln is not None:
            kv = fused_layernorm_linear(context, context_ln[0], context_ln[1],
                                        self.w_kv, self.b_kv)
        else:
            kv = pallas_linear(context, self.w_kv, self.b_kv)
        k = kv[..., :self.inner]
        v = kv[..., self.inner:]
        scale = self.inner ** -0.5
        # TODO(synk): the softmax attention of the wrapped fn is left in plain JAX
        # (fn is arbitrary and not part of PreNorm); a flash-attention Pallas kernel
        # would fuse it for long sequences.
        attn = jax.nn.softmax(jnp.einsum('bqd,bkd->bqk', q, k) * scale, axis=-1)
        out = jnp.einsum('bqk,bkd->bqd', attn, v)
        return pallas_linear(out, self.wo, self.bo)


# --------------------------------------------------------------------------- reference ---

def _layer_norm_ref(x, g, b):
    mean = jnp.mean(x, axis=-1, keepdims=True)
    var = jnp.mean((x - mean) ** 2, axis=-1, keepdims=True)
    return (x - mean) / jnp.sqrt(var + _LN_EPS) * g + b


def _prenorm_ff_ref(x, pre):
    h = _layer_norm_ref(x, pre.g, pre.b)
    h = _gelu(h @ pre.fn.w1 + pre.fn.b1)
    return h @ pre.fn.w2 + pre.fn.b2


def _prenorm_attn_ref(x, ctx, pre):
    fn = pre.fn
    xn = _layer_norm_ref(x, pre.g, pre.b)
    cn = _layer_norm_ref(ctx, pre.gc, pre.bc)
    q = xn @ fn.wq + fn.bq
    k = cn @ fn.wk + fn.bk
    v = cn @ fn.wv + fn.bv
    attn = jax.nn.softmax(jnp.einsum('bqd,bkd->bqk', q, k) * (fn.inner ** -0.5), axis=-1)
    out = jnp.einsum('bqk,bkd->bqd', attn, v)
    return out @ fn.wo + fn.bo


# --------------------------------------------------------------------------------- main ---

if __name__ == "__main__":
    B, N, dim = 2, 16, 32
    M, context_dim = 8, 64
    hidden, inner = 64, 32

    key = jax.random.PRNGKey(0)
    kx, kc, kff, kat, kp1, kp2, kp3 = jax.random.split(key, 7)
    x = jax.random.normal(kx, (B, N, dim), jnp.float32)
    context = jax.random.normal(kc, (B, M, context_dim), jnp.float32)

    # Case 1: PreNorm without context (fn = feed-forward; LN fused into first matmul)
    pre_ff = PreNorm(dim, FeedForward(dim, hidden, kff), key=kp1)
    y1 = pre_ff(x)
    jax.block_until_ready(y1)
    assert y1.shape == (B, N, dim)
    ref1 = _prenorm_ff_ref(x, pre_ff)
    assert jnp.allclose(y1, ref1, atol=1e-2, rtol=1e-2)

    # Case 2: PreNorm with context_dim (both x and context LayerNormed, fused into q / kv)
    pre_attn = PreNorm(dim, CrossAttention(dim, context_dim, inner, kat),
                       context_dim=context_dim, key=kp2)
    y2 = pre_attn(x, context=context)
    jax.block_until_ready(y2)
    assert y2.shape == (B, N, dim)
    ref2 = _prenorm_attn_ref(x, context, pre_attn)
    assert jnp.allclose(y2, ref2, atol=1e-2, rtol=1e-2)

    # Case 3: generic fn (no fusion hook) -> standalone Pallas LayerNorm fallback path.
    pre_id = PreNorm(dim, lambda t: t, key=kp3)
    y3 = pre_id(x)
    jax.block_until_ready(y3)
    assert jnp.allclose(y3, _layer_norm_ref(x, pre_id.g, pre_id.b), atol=1e-4, rtol=1e-4)

    assert jnp.all(jnp.isfinite(y1)) and jnp.all(jnp.isfinite(y2)) and jnp.all(jnp.isfinite(y3))
    print("KERNEL_OK")
</pallas_src>

<mosaic_0001>
module attributes {stable_mosaic.version = 11 : i64} {
  func.func @_ln_linear_kernel(%arg0: i32, %arg1: i32, %arg2: memref<32x32xf32, #tpu.memory_space<vmem>>, %arg3: memref<1x32xf32, #tpu.memory_space<vmem>>, %arg4: memref<1x32xf32, #tpu.memory_space<vmem>>, %arg5: memref<32x64xf32, #tpu.memory_space<vmem>>, %arg6: memref<1x64xf32, #tpu.memory_space<vmem>>, %arg7: memref<32x64xf32, #tpu.memory_space<vmem>>, %arg8: memref<32x32xf32, #tpu.memory_space<vmem>>) attributes {dimension_semantics = [#tpu.dimension_semantics<parallel>, #tpu.dimension_semantics<arbitrary>], iteration_bounds = array<i64: 1, 1>, scalar_prefetch = 0 : i64, scratch_operands = 1 : i64, tpu.core_type = #tpu.core_type<tc>, window_params = [{transform_indices = @transform_0, window_bounds = array<i64: 32, 32>}, {pipeline_mode = #tpu.pipeline_mode<synchronous>, transform_indices = @transform_1, window_bounds = array<i64: 1, 32>}, {pipeline_mode = #tpu.pipeline_mode<synchronous>, transform_indices = @transform_2, window_bounds = array<i64: 1, 32>}, {transform_indices = @transform_3, window_bounds = array<i64: 32, 64>}, {transform_indices = @transform_4, window_bounds = array<i64: 1, 64>}, {transform_indices = @transform_5, window_bounds = array<i64: 32, 64>}]} {
    %c0_i32 = arith.constant 0 : i32
    %0 = arith.cmpi eq, %arg1, %c0_i32 : i32
    %1 = arith.extui %0 : i1 to i32
    %c0_i32_0 = arith.constant 0 : i32
    %2 = arith.cmpi ne, %1, %c0_i32_0 : i32
    scf.if %2 {
      %c0_12 = arith.constant 0 : index
      %c0_13 = arith.constant 0 : index
      %23 = vector.load %arg2[%c0_12, %c0_13] : memref<32x32xf32, #tpu.memory_space<vmem>>, vector<32x32xf32>
      %cst_14 = arith.constant dense<0.000000e+00> : vector<32xf32>
      %24 = vector.multi_reduction <add>, %23, %cst_14 [1] : vector<32x32xf32> to vector<32xf32>
      %25 = vector.shape_cast %24 : vector<32xf32> to vector<32x1xf32>
      %26 = arith.mulf %23, %23 : vector<32x32xf32>
      %cst_15 = arith.constant dense<0.000000e+00> : vector<32xf32>
      %27 = vector.multi_reduction <add>, %26, %cst_15 [1] : vector<32x32xf32> to vector<32xf32>
      %28 = vector.shape_cast %27 : vector<32xf32> to vector<32x1xf32>
      %cst_16 = arith.constant 3.125000e-02 : f32
      %29 = vector.broadcast %cst_16 : f32 to vector<32x1xf32>
      %30 = arith.mulf %25, %29 : vector<32x1xf32>
      %cst_17 = arith.constant 3.125000e-02 : f32
      %31 = vector.broadcast %cst_17 : f32 to vector<32x1xf32>
      %32 = arith.mulf %28, %31 : vector<32x1xf32>
      %33 = arith.mulf %30, %30 : vector<32x1xf32>
      %34 = arith.subf %32, %33 : vector<32x1xf32>
      %cst_18 = arith.constant 0.000000e+00 : f32
      %35 = vector.broadcast %cst_18 : f32 to vector<32x1xf32>
      %36 = arith.maximumf %34, %35 : vector<32x1xf32>
      %37 = vector.broadcast %30 : vector<32x1xf32> to vector<32x32xf32>
      %38 = arith.subf %23, %37 : vector<32x32xf32>
      %cst_19 = arith.constant 9.99999974E-6 : f32
      %39 = vector.broadcast %cst_19 : f32 to vector<32x1xf32>
      %40 = arith.addf %36, %39 : vector<32x1xf32>
      %41 = math.rsqrt %40 : vector<32x1xf32>
      %42 = vector.broadcast %41 : vector<32x1xf32> to vector<32x32xf32>
      %43 = arith.mulf %38, %42 : vector<32x32xf32>
      %c0_20 = arith.constant 0 : index
      %c0_21 = arith.constant 0 : index
      %44 = vector.load %arg3[%c0_20, %c0_21] : memref<1x32xf32, #tpu.memory_space<vmem>>, vector<1x32xf32>
      %45 = vector.broadcast %44 : vector<1x32xf32> to vector<32x32xf32>
      %46 = arith.mulf %43, %45 : vector<32x32xf32>
      %c0_22 = arith.constant 0 : index
      %c0_23 = arith.constant 0 : index
      %47 = vector.load %arg4[%c0_22, %c0_23] : memref<1x32xf32, #tpu.memory_space<vmem>>, vector<1x32xf32>
      %48 = vector.broadcast %47 : vector<1x32xf32> to vector<32x32xf32>
      %49 = arith.addf %46, %48 : vector<32x32xf32>
      %c0_24 = arith.constant 0 : index
      %c0_25 = arith.constant 0 : index
      %50 = vector.load %arg8[%c0_24, %c0_25] : memref<32x32xf32, #tpu.memory_space<vmem>>, vector<32x32xf32>
      tpu.vector_store %arg8[%c0_24, %c0_25], %49 {strides = array<i32>} : memref<32x32xf32, #tpu.memory_space<vmem>>, vector<32x32xf32>,
    } else {
    }
    %c0 = arith.constant 0 : index
    %c0_1 = arith.constant 0 : index
    %3 = vector.load %arg8[%c0, %c0_1] : memref<32x32xf32, #tpu.memory_space<vmem>>, vector<32x32xf32>
    %c0_2 = arith.constant 0 : index
    %c0_3 = arith.constant 0 : index
    %4 = vector.load %arg5[%c0_2, %c0_3] : memref<32x64xf32, #tpu.memory_space<vmem>>, vector<32x64xf32>
    %cst = arith.constant dense<0.000000e+00> : vector<32x64xf32>
    %5 = tpu.matmul %3, %4, %cst {dimension_numbers = #tpu.dot_dimension_numbers<[1], [0], [0], [1], [0, 0, 1, 1], [], []>} : vector<32x32xf32>, vector<32x64xf32>, vector<32x64xf32> -> vector<32x64xf32>
    %c0_4 = arith.constant 0 : index
    %c0_5 = arith.constant 0 : index
    %6 = vector.load %arg6[%c0_4, %c0_5] : memref<1x64xf32, #tpu.memory_space<vmem>>, vector<1x64xf32>
    %7 = vector.broadcast %6 : vector<1x64xf32> to vector<32x64xf32>
    %8 = arith.addf %5, %7 : vector<32x64xf32>
    %cst_6 = arith.constant 5.000000e-01 : f32
    %9 = vector.broadcast %cst_6 : f32 to vector<32x64xf32>
    %10 = arith.mulf %9, %8 : vector<32x64xf32>
    %cst_7 = arith.constant 4.471500e-02 : f32
    %11 = vector.broadcast %cst_7 : f32 to vector<32x64xf32>
    %12 = arith.mulf %11, %8 : vector<32x64xf32>
    %13 = arith.mulf %12, %8 : vector<32x64xf32>
    %14 = arith.mulf %13, %8 : vector<32x64xf32>
    %15 = arith.addf %8, %14 : vector<32x64xf32>
    %cst_8 = arith.constant 0.797884583 : f32
    %16 = vector.broadcast %cst_8 : f32 to vector<32x64xf32>
    %17 = arith.mulf %16, %15 : vector<32x64xf32>
    %18 = math.tanh %17 : vector<32x64xf32>
    %cst_9 = arith.constant 1.000000e+00 : f32
    %19 = vector.broadcast %cst_9 : f32 to vector<32x64xf32>
    %20 = arith.addf %19, %18 : vector<32x64xf32>
    %21 = arith.mulf %10, %20 : vector<32x64xf32>
    %c0_10 = arith.constant 0 : index
    %c0_11 = arith.constant 0 : index
    %22 = vector.load %arg7[%c0_10, %c0_11] : memref<32x64xf32, #tpu.memory_space<vmem>>, vector<32x64xf32>
    tpu.vector_store %arg7[%c0_10, %c0_11], %21 {strides = array<i32>} : memref<32x64xf32, #tpu.memory_space<vmem>>, vector<32x64xf32>,
    return
  }
  func.func @transform_0(%arg0: i32, %arg1: i32) -> (i32, i32) {
    %c0_i32 = arith.constant 0 : i32
    %c0_i32_0 = arith.constant 0 : i32
    return %arg0, %c0_i32 : i32, i32
  }
  func.func @transform_1(%arg0: i32, %arg1: i32) -> (i32, i32) {
    %c0_i32 = arith.constant 0 : i32
    %c0_i32_0 = arith.constant 0 : i32
    %c0_i32_1 = arith.constant 0 : i32
    return %c0_i32, %c0_i32_0 : i32, i32
  }
  func.func @transform_2(%arg0: i32, %arg1: i32) -> (i32, i32) {
    %c0_i32 = arith.constant 0 : i32
    %c0_i32_0 = arith.constant 0 : i32
    %c0_i32_1 = arith.constant 0 : i32
    return %c0_i32, %c0_i32_0 : i32, i32
  }
  func.func @transform_3(%arg0: i32, %arg1: i32) -> (i32, i32) {
    %c0_i32 = arith.constant 0 : i32
    %c0_i32_0 = arith.constant 0 : i32
    return %c0_i32, %arg1 : i32, i32
  }
  func.func @transform_4(%arg0: i32, %arg1: i32) -> (i32, i32) {
    %c0_i32 = arith.constant 0 : i32
    %c0_i32_0 = arith.constant 0 : i32
    return %c0_i32, %arg1 : i32, i32
  }
  func.func @transform_5(%arg0: i32, %arg1: i32) -> (i32, i32) {
    %c0_i32 = arith.constant 0 : i32
    return %arg0, %arg1 : i32, i32
  }
}

</mosaic_0001>

<bundles_post_ra>
// kernel: tpu_custom_call.1
= control target key start
LH: loop header
LB: loop body
LE: loop exit
PB: predicated region body
PF: predicated region fallthrough
CT: control target
= control target key end

     0   :  { %10 = vsyncpa [#allocation4], 0  ;;  %s587_s0 = inlined_call_operand.hbm [shape: f32[32,32], index: 0, kind: input, shape index: {}]   ;;  %s588_s1 = inlined_call_operand.vmem [shape: f32[1,32], index: 1, kind: input, shape index: {}]   ;;  %s589_s2 = inlined_call_operand.vmem [shape: f32[1,32], index: 2, kind: input, shape index: {}]   ;;  %s590_s3 = inlined_call_operand.hbm [shape: f32[32,64], index: 3, kind: input, shape index: {}]   ;;  %s591_s4 = inlined_call_operand.vmem [shape: f32[1,64], index: 4, kind: input, shape index: {}]   ;;  %s592_s5 = inlined_call_operand.hbm [shape: f32[32,64], index: 5, kind: output, shape index: {}]  }
   0x1   :  { %11 = vsyncpa [#allocation7], 0 }
   0x2   :  { %12 = vsyncpa [#allocation5], 0  ;;  %s454_s18 = smov [#allocation3]   ;;  %s382_s22 = scalar_lea.hbm %s587_s0, 512 }
   0x3   :  { %s18_s19 = sshll.u32 %s454_s18, 4  ;;  %p383_p0 = scmp.ne.s32.totalorder %s587_s0, %s382_s22  ;;  %s19_s19 = int_to_ptr.vmem [resolvable:$true] %s18_s19 }
   0x4   :  { %p386_p1 = scmp.lt.u32.totalorder %s382_s22, %s587_s0 }
   0x6   :  { %p388_p2 = pnand %p386_p1, %p383_p0 }
   0x8   :  { %391 = shalt.err (!%p388_p2)
}
   0x9   :  { %s392_s27 = scalar_lea.vmem %s19_s19, 512  ;;  %p397_p4 = scmp.lt.s32.totalorder %s19_s19, %s19_s19 }
   0xa   :  { %p393_p3 = scmp.ne.s32.totalorder %s19_s19, %s392_s27  ;;  %p398_p5 = scmp.lt.s32.totalorder %s392_s27, %s392_s27 }
   0xc   :  { %p399_p6 = por %p398_p5, %p397_p4 }
   0xe   :  { %p400_p7 = pnand %p399_p6, %p393_p3 }
  0x10   :  { %403 = shalt.err (!%p400_p7)
}
  0x11   :  { %s455_s28 = smov 128   ;;  %s456_s29 = smov 8  }
  0x12   :  { %24 = dma.hbm_to_vmem [thread:$0]  %s587_s0, 512, %s19_s19, [#allocation4], %s455_s28, %s455_s28, %s456_s29  }
  0x13   :  { %s457_s7 = smov [#allocation6]   ;;  %s404_s11 = scalar_lea.hbm %s590_s3, 512 }
  0x14   :  { %s34_s8 = sshll.u32 %s457_s7, 4  ;;  %p405_p8 = scmp.ne.s32.totalorder %s590_s3, %s404_s11  ;;  %s35_s8 = int_to_ptr.vmem [resolvable:$true] %s34_s8 }
  0x15   :  { %p408_p9 = scmp.lt.u32.totalorder %s404_s11, %s590_s3 }
  0x17   :  { %p410_p10 = pnand %p408_p9, %p405_p8 }
  0x19   :  { %413 = shalt.err (!%p410_p10)
}
  0x1a   :  { %s414_s16 = scalar_lea.vmem %s35_s8, 512  ;;  %p419_p12 = scmp.lt.s32.totalorder %s35_s8, %s35_s8 }
  0x1b   :  { %p415_p11 = scmp.ne.s32.totalorder %s35_s8, %s414_s16  ;;  %p420_p13 = scmp.lt.s32.totalorder %s414_s16, %s414_s16 }
  0x1d   :  { %p421_p0 = por %p420_p13, %p419_p12 }
  0x1f   :  { %p422_p1 = pnand %p421_p0, %p415_p11 }
  0x21   :  { %425 = shalt.err (!%p422_p1)
}
  0x22   :  { %40 = dma.hbm_to_vmem [thread:$0]  %s590_s3, 512, %s35_s8, [#allocation7], %s455_s28, %s455_s28, %s456_s29  }
  0x23   :  { %448 = dma.done.wait [#allocation4], 512  }
  0x24   :  { %449 = vsyncadd [#allocation4], 4294966784 }
  0x25   :  { %450 = dma.done.wait [#allocation7], 512  }
  0x26   :  { %451 = vsyncadd [#allocation7], 4294966784  ;;  %vm57_vm0 = vcmask 261120   ;;  %v519_v0 = vld [vmem:[#allocation3 + $0x8] sm:$0xff]  ;;  %v521_v1 = vld [vmem:[#allocation3] sm:$0xff]  ;;  %vm297_vm1 = vcmask 523264  }
  0x27   :  { %v523_v2 = vld [vmem:[#allocation3 + $0x18] sm:$0xff]  ;;  %v61_v3 = vsel %vm57_vm0, %v519_v0, 0.0  ;;  %v58_v4 = vsel %vm57_vm0, %v521_v1, 0.0  ;;  %v529_v5 = vld [vmem:[#allocation3 + $0x10] sm:$0xff]  ;;  %v70_v9 = vmul.f32 %v521_v1, %v521_v1  ;;  %v71_v13 = vmul.f32 %v519_v0, %v519_v0  ;;  %v152_v16 = vld [vmem:[#allocation6] sm:$0xff] }
  0x28   :  { %62 = vadd.xlane.f32.xlu1 %v61_v3  ;;  %59 = vadd.xlane.f32.xlu0 %v58_v4  ;;  %v67_v6 = vsel %vm57_vm0, %v523_v2, 0.0  ;;  %v64_v7 = vsel %vm57_vm0, %v529_v5, 0.0  ;;  %v72_v8 = vmul.f32 %v529_v5, %v529_v5  ;;  %v73_v12 = vmul.f32 %v523_v2, %v523_v2  ;;  %v153_v17 = vld [vmem:[#allocation6 + $0x8] sm:$0xff]  ;;  %v154_v19 = vld [vmem:[#allocation6 + $0x10] sm:$0xff]  ;;  %v155_v20 = vld [vmem:[#allocation6 + $0x18] sm:$0xff] }
  0x29   :  { %v74_v11 = vsel %vm57_vm0, %v70_v9, 0.0  ;;  %v77_v15 = vsel %vm57_vm0, %v71_v13, 0.0  ;;  %v349_v18 = vpack.c.bf16 %v153_v17, %v152_v16  ;;  %v353_v21 = vpack.c.bf16 %v155_v20, %v154_v19  ;;  %v320_v57 = vld [vmem:[%s588_s1] ss:$0 sm:$0xff] }
  0x2a   :  { %v80_v10 = vsel %vm57_vm0, %v72_v8, 0.0  ;;  %v83_v14 = vsel %vm57_vm0, %v73_v12, 0.0  ;;  %v321_v60 = vld [vmem:[%s589_s2] ss:$0 sm:$0xff] }
  0x2b   :  { %350 = vmatprep.subr.bf16.mxu0 %v349_v18  ;;  %357 = vmatprep.subr.bf16.mxu1 %v349_v18  ;;  %v322_v16 = vld [vmem:[%s591_s4] ss:$0 sm:$0xff]  ;;  %s458_s4 = smov [#allocation8]  }
  0x2c   :  { %68 = vadd.xlane.f32.xlu1 %v67_v6  ;;  %65 = vadd.xlane.f32.xlu0 %v64_v7  ;;  %s307_s21 = sshll.u32 %s458_s4, 4  ;;  %s308_s21 = int_to_ptr.vmem [resolvable:$true] %s307_s21 }
  0x2d   :  { %352 = vmatpush3.bf16.msra.mxu0 %v349_v18  ;;  %359 = vmatpush3.bf16.msra.mxu1 %v349_v18  ;;  %s426_s22 = scalar_lea.vmem %s308_s21, 512  ;;  %p431_p3 = scmp.lt.s32.totalorder %s308_s21, %s308_s21 }
  0x2e   :  { %354 = vmatprep.subr.bf16.mxu0 %v353_v21  ;;  %358 = vmatprep.subr.bf16.mxu1 %v353_v21  ;;  %p427_p2 = scmp.ne.s32.totalorder %s308_s21, %s426_s22  ;;  %p432_p4 = scmp.lt.s32.totalorder %s426_s22, %s426_s22 }
  0x30   :  { %81 = vadd.xlane.f32.xlu1 %v80_v10  ;;  %75 = vadd.xlane.f32.xlu0 %v74_v11  ;;  %p433_p5 = por %p432_p4, %p431_p3 }
  0x31   :  { %356 = vmatpush3.bf16.msra.mxu0 %v353_v21  ;;  %360 = vmatpush3.bf16.msra.mxu1 %v353_v21 }
  0x32   :  { %p434_p6 = pnand %p433_p5, %p427_p2 }
  0x34   :  { %84 = vadd.xlane.f32.xlu1 %v83_v14  ;;  %78 = vadd.xlane.f32.xlu0 %v77_v15 }
  0xb5   :  { %v63_v22 = vpop.xlane.xlu1 %62  ;;  %v60_v23 = vpop.xlane.xlu0 %59 }
  0xb6   :  { %v86_v26 = vmul.f32 0.03125, %v60_v23  ;;  %v87_v28 = vmul.f32 0.03125, %v63_v22 }
  0xb8   :  { %v94_v32 = vmul.f32 %v86_v26, %v86_v26  ;;  %v95_v38 = vmul.f32 %v87_v28, %v87_v28  ;;  %v106_v56 = vsub.f32 %v521_v1, %v86_v26  ;;  %v107_v4 = vsub.f32 %v519_v0, %v87_v28 }
  0xb9   :  { %v69_v24 = vpop.xlane.xlu1 %68  ;;  %v66_v25 = vpop.xlane.xlu0 %65 }
  0xba   :  { %v88_v27 = vmul.f32 0.03125, %v66_v25  ;;  %v89_v29 = vmul.f32 0.03125, %v69_v24 }
  0xbc   :  { %v96_v33 = vmul.f32 %v88_v27, %v88_v27  ;;  %v97_v39 = vmul.f32 %v89_v29, %v89_v29  ;;  %v108_v54 = vsub.f32 %v529_v5, %v88_v27  ;;  %v109_v62 = vsub.f32 %v523_v2, %v89_v29 }
  0xbd   :  { %v82_v30 = vpop.xlane.xlu1 %81  ;;  %v76_v31 = vpop.xlane.xlu0 %75 }
  0xbe   :  { %v92_v34 = vmul.f32 0.03125, %v82_v30  ;;  %v90_v35 = vmul.f32 0.03125, %v76_v31 }
  0xc0   :  { %v100_v36 = vsub.f32 %v92_v34, %v96_v33  ;;  %v98_v37 = vsub.f32 %v90_v35, %v94_v32 }
  0xc1   :  { %v85_v40 = vpop.xlane.xlu1 %84  ;;  %v79_v41 = vpop.xlane.xlu0 %78 }
  0xc2   :  { %v104_v42 = vmax.f32 %v100_v36, 0.0  ;;  %v102_v43 = vmax.f32 %v98_v37, 0.0  ;;  %v93_v44 = vmul.f32 0.03125, %v85_v40  ;;  %v91_v45 = vmul.f32 0.03125, %v79_v41 }
  0xc4   :  { %v112_v46 = vadd.f32 1e-05, %v104_v42  ;;  %v110_v47 = vadd.f32 1e-05, %v102_v43  ;;  %v101_v48 = vsub.f32 %v93_v44, %v97_v39  ;;  %v99_v49 = vsub.f32 %v91_v45, %v95_v38 }
  0xc6   :  { %366 = vrsqrt.f32 %v112_v46  ;;  %v105_v50 = vmax.f32 %v101_v48, 0.0  ;;  %v103_v51 = vmax.f32 %v99_v49, 0.0 }
  0xc7   :  { %368 = vrsqrt.f32 %v110_v47 }
  0xc8   :  { %v113_v52 = vadd.f32 1e-05, %v105_v50  ;;  %v111_v53 = vadd.f32 1e-05, %v103_v51 }
  0xca   :  { %370 = vrsqrt.f32 %v113_v52 }
  0xcb   :  { %372 = vrsqrt.f32 %v111_v53 }
  0xd0   :  { %v367_v55 = vpop.eup %366 }
  0xd1   :  { %v369_v58 = vpop.eup %368  ;;  %v120_v59 = vmul.f32 %v367_v55, %v108_v54 }
  0xd2   :  { %v118_v61 = vmul.f32 %v369_v58, %v106_v56 }
  0xd3   :  { %v131_v63 = vmul.f32 %v320_v57, %v120_v59 }
  0xd4   :  { %v371_v3 = vpop.eup %370  ;;  %v129_v5 = vmul.f32 %v320_v57, %v118_v61 }
  0xd5   :  { %v373_v6 = vpop.eup %372  ;;  %v142_v1 = vadd.f32 %v321_v60, %v131_v63  ;;  %v121_v7 = vmul.f32 %v371_v3, %v109_v62 }
  0xd6   :  { %v140_v8 = vadd.f32 %v321_v60, %v129_v5  ;;  %v119_v9 = vmul.f32 %v373_v6, %v107_v4 }
  0xd7   :  { %146 = vst.msk [vmem:[#allocation2 + $0x10] sm:$0xff] %vm57_vm0, %v142_v1  ;;  %v132_v10 = vmul.f32 %v320_v57, %v121_v7 }
  0xd8   :  { %144 = vst.msk [vmem:[#allocation2] sm:$0xff] %vm57_vm0, %v140_v8  ;;  %v130_v11 = vmul.f32 %v320_v57, %v119_v9 }
  0xd9   :  { %v143_v12 = vadd.f32 %v321_v60, %v132_v10 }
  0xda   :  { %v141_v13 = vadd.f32 %v321_v60, %v130_v11 }
  0xdb   :  { %147 = vst.msk [vmem:[#allocation2 + $0x18] sm:$0xff] %vm57_vm0, %v143_v12 }
  0xdc   :  { %145 = vst.msk [vmem:[#allocation2 + $0x8] sm:$0xff] %vm57_vm0, %v141_v13 }
  0xde   :  { %v150_v2 = vld [vmem:[#allocation2 + $0x10] sm:$0xff] }
  0xdf   :  { %v148_v0 = vld [vmem:[#allocation2] sm:$0xff]  ;;  %346 = vmatprep.mubr.msk.f32.mxu1 %vm57_vm0, %v150_v2 }
  0xe0   :  { %343 = vmatprep.mubr.msk.f32.mxu0 %vm57_vm0, %v148_v0 }
  0xe2   :  { %v151_v14 = vld [vmem:[#allocation2 + $0x18] sm:$0xff] }
  0xe3   :  { %v149_v15 = vld [vmem:[#allocation2 + $0x8] sm:$0xff]  ;;  %347 = vmatmul.mubr.msk.f32.vlgmr.msra.gmra.mrb[0].mxu1 %vm57_vm0, %v151_v14 }
  0xe4   :  { %344 = vmatmul.mubr.msk.f32.vlgmr.msra.gmra.mrb[0].mxu0 %vm57_vm0, %v149_v15 }
 0x1b6   :  { %v348_v17 = vpop.f32.mrb[0].mxu1 }
 0x1b7   :  { %v345_v18 = vpop.f32.mrb[0].mxu0  ;;  %v258_v19 = vadd.f32 %v348_v17, %v322_v16  ;;  %v252_v20 = vpop.f32.mrb[1].mxu1 }
 0x1b8   :  { %v248_v21 = vadd.f32 %v345_v18, %v322_v16  ;;  %v242_v22 = vpop.f32.mrb[1].mxu0  ;;  %v253_v23 = vadd.f32 %v322_v16, %v252_v20 }
 0x1b9   :  { %v268_v24 = vmul.f32 0.044715, %v258_v19  ;;  %v243_v25 = vadd.f32 %v322_v16, %v242_v22  ;;  %v264_v47 = vmul.f32 0.5, %v258_v19 }
 0x1ba   :  { %v266_v26 = vmul.f32 0.044715, %v248_v21  ;;  %v267_v27 = vmul.f32 0.044715, %v253_v23  ;;  %v262_v50 = vmul.f32 0.5, %v248_v21  ;;  %v263_v56 = vmul.f32 0.5, %v253_v23 }
 0x1bb   :  { %v272_v28 = vmul.f32 %v268_v24, %v258_v19  ;;  %v265_v29 = vmul.f32 0.044715, %v243_v25  ;;  %v261_v53 = vmul.f32 0.5, %v243_v25 }
 0x1bc   :  { %v270_v30 = vmul.f32 %v266_v26, %v248_v21  ;;  %v271_v31 = vmul.f32 %v267_v27, %v253_v23 }
 0x1bd   :  { %v276_v32 = vmul.f32 %v272_v28, %v258_v19  ;;  %v269_v33 = vmul.f32 %v265_v29, %v243_v25 }
 0x1be   :  { %v274_v34 = vmul.f32 %v270_v30, %v248_v21  ;;  %v275_v35 = vmul.f32 %v271_v31, %v253_v23 }
 0x1bf   :  { %v280_v36 = vadd.f32 %v276_v32, %v258_v19  ;;  %v273_v37 = vmul.f32 %v269_v33, %v243_v25 }
 0x1c0   :  { %v278_v38 = vadd.f32 %v274_v34, %v248_v21  ;;  %v279_v39 = vadd.f32 %v275_v35, %v253_v23 }
 0x1c1   :  { %v284_v40 = vmul.f32 0.7978846, %v280_v36  ;;  %v277_v41 = vadd.f32 %v273_v37, %v243_v25 }
 0x1c2   :  { %v282_v42 = vmul.f32 0.7978846, %v278_v38  ;;  %v283_v43 = vmul.f32 0.7978846, %v279_v39 }
 0x1c3   :  { %374 = vtanh.f32 %v284_v40  ;;  %v281_v44 = vmul.f32 0.7978846, %v277_v41 }
 0x1c4   :  { %376 = vtanh.f32 %v282_v42 }
 0x1c5   :  { %378 = vtanh.f32 %v281_v44 }
 0x1c6   :  { %380 = vtanh.f32 %v283_v43 }
 0x1cd   :  { %v375_v45 = vpop.eup %374 }
 0x1ce   :  { %v377_v46 = vpop.eup %376  ;;  %v292_v48 = vadd.f32 1.0, %v375_v45 }
 0x1cf   :  { %v379_v49 = vpop.eup %378  ;;  %v290_v51 = vadd.f32 1.0, %v377_v46 }
 0x1d0   :  { %v381_v52 = vpop.eup %380  ;;  %v289_v54 = vadd.f32 1.0, %v379_v49  ;;  %v296_v55 = vmul.f32 %v292_v48, %v264_v47 }
 0x1d1   :  { %v291_v57 = vadd.f32 1.0, %v381_v52  ;;  %v294_v58 = vmul.f32 %v290_v51, %v262_v50 }
 0x1d2   :  { %v293_v59 = vmul.f32 %v289_v54, %v261_v53  ;;  %301 = vst.msk [vmem:[#allocation8 + $0x18] sm:$0xff] %vm297_vm1, %v296_v55 }
 0x1d3   :  { %v295_v60 = vmul.f32 %v291_v57, %v263_v56  ;;  %299 = vst.msk [vmem:[#allocation8 + $0x8] sm:$0xff] %vm297_vm1, %v294_v58 }
 0x1d4   :  { %298 = vst.msk [vmem:[#allocation8] sm:$0xff] %vm297_vm1, %v293_v59 }
 0x1d5   :  { %300 = vst.msk [vmem:[#allocation8 + $0x10] sm:$0xff] %vm297_vm1, %v295_v60 }
 0x1d6   :  { %437 = shalt.err (!%p434_p6)
}
 0x1d7   :  { %s438_s25 = scalar_lea.hbm %s592_s5, 512 }
 0x1d8   :  { %p439_p7 = scmp.ne.s32.totalorder %s592_s5, %s438_s25  ;;  %p442_p8 = scmp.lt.u32.totalorder %s438_s25, %s592_s5 }
 0x1da   :  { %p444_p9 = pnand %p442_p8, %p439_p7 }
 0x1dc   :  { %447 = shalt.err (!%p444_p9)
}
 0x1dd   :  { %313 = dma.vmem_to_hbm [thread:$0]  %s308_s21, 512, %s592_s5, [#allocation5], %s455_s28, %s455_s28, %s456_s29  }
 0x1de   :  { %452 = dma.done.wait [#allocation5], 512  }
 0x1df   :  { %453 = vsyncadd [#allocation5], 4294966784 }
 0x1e0   :  { %317 = vsyncpa [#allocation4], 1 }
 0x1e1   :  { %318 = vsyncpa [#allocation7], 1 }
 0x1e2   :  { %319 = vsyncpa [#allocation5], 1 }

</bundles_post_ra>
